<compile_context>
chip_gen: v7x
topology: tpu7x:2x2x1
jax: 0.10.0
libtpu: 0.0.40
codegen_flags: <defaults>
</compile_context>

<pallas_src>
import functools

import jax
import jax.numpy as jnp
from jax.experimental import pallas as pl
from jax.experimental.pallas import tpu as pltpu

_INV_SQRT2 = 0.7071067811865475  # 1/sqrt(2), folded literal


def _mlp_kernel(x_ref, w1_ref, w2_ref, o_ref):
    # fc1: (tm, in) @ (in, hidden) on the MXU, f32 accumulation.
    h = jnp.dot(x_ref[...], w1_ref[...], preferred_element_type=jnp.float32)
    # Exact (erf) GELU, matching torch.nn.GELU() default; math kept in f32.
    h = 0.5 * h * (1.0 + jax.lax.erf(h * _INV_SQRT2))
    # dropout(p=0.0) is the identity -> nothing to do.
    # fc2: cast GELU output back to the streaming dtype so bf16 inputs give a
    # bf16 x bf16 MXU matmul; accumulate in f32.
    out = jnp.dot(h.astype(x_ref.dtype), w2_ref[...],
                  preferred_element_type=jnp.float32)
    o_ref[...] = out.astype(o_ref.dtype)


def _round_up(x, m):
    return (x + m - 1) // m * m


@jax.jit
def adaptor_mlp(x, w1_t, w2_t):
    """x: (..., in_features); w1_t: (in, hidden); w2_t: (hidden, out)."""
    orig_shape = x.shape
    in_features, hidden = w1_t.shape
    out_features = w2_t.shape[1]
    dtype = x.dtype
    itemsize = jnp.dtype(dtype).itemsize
    is_bf16 = dtype == jnp.bfloat16

    x2d = x.reshape(-1, in_features)
    m = x2d.shape[0]

    # ---- choose the M tile ------------------------------------------------
    # Budget: W1 + W2 resident + 2x double-buffered x tile + 2x out tile
    # + f32 hidden intermediate, inside ~40 MiB (fits v7x 64 MiB VMEM too).
    vmem_budget = 40 * 1024 * 1024
    weight_bytes = (in_features * hidden + hidden * out_features) * itemsize
    # TODO(synk): if the weights themselves exceed the VMEM budget (full
    # transformer sizes), K/N-tile the weights instead of holding them resident.
    per_row_bytes = 2 * (in_features + out_features) * itemsize + 4 * hidden
    tm_budget = max(8, (vmem_budget - weight_bytes) // max(per_row_bytes, 1))
    tm_target = 1024 if is_bf16 else 512
    align = 16 if is_bf16 else 8
    tm = min(tm_target, int(tm_budget))
    tm = max(align, (tm // align) * align)
    tm = min(tm, _round_up(m, align))  # don't exceed the (rounded) problem

    # Pad rows so every grid step sees a full tile.
    m_pad = _round_up(m, tm)
    if m_pad != m:
        x2d = jnp.pad(x2d, ((0, m_pad - m), (0, 0)))

    grid = (m_pad // tm,)

    out2d = pl.pallas_call(
        _mlp_kernel,
        out_shape=jax.ShapeDtypeStruct((m_pad, out_features), dtype),
        grid_spec=pltpu.PrefetchScalarGridSpec(
            num_scalar_prefetch=0,
            grid=grid,
            in_specs=[
                # Activations stream: one M tile per grid step.
                pl.BlockSpec((tm, in_features), lambda i: (i, 0)),
                # Weights stay VMEM-resident across the whole grid.
                pl.BlockSpec((in_features, hidden), lambda i: (0, 0)),
                pl.BlockSpec((hidden, out_features), lambda i: (0, 0)),
            ],
            out_specs=pl.BlockSpec((tm, out_features), lambda i: (i, 0)),
        ),
        compiler_params=pltpu.CompilerParams(
            dimension_semantics=("parallel",),   # megacore-shard M on v7x
            vmem_limit_bytes=48 * 1024 * 1024,
        ),
    )(x2d, w1_t, w2_t)

    if m_pad != m:
        out2d = out2d[:m]
    return out2d.reshape(*orig_shape[:-1], out_features)


def reference_mlp(x, w1_t, w2_t):
    h = x.astype(jnp.float32) @ w1_t.astype(jnp.float32)
    h = 0.5 * h * (1.0 + jax.lax.erf(h * _INV_SQRT2))
    return (h @ w2_t.astype(jnp.float32)).astype(x.dtype)


if __name__ == "__main__":
    # Module hyperparameters (synthetic, deterministic init)
    batch, seq = 2, 8
    in_features = 32
    hidden_features = 64
    out_features = 32

    key = jax.random.PRNGKey(0)
    kx, k1, k2 = jax.random.split(key, 3)

    x = jax.random.normal(kx, (batch, seq, in_features), dtype=jnp.float32)

    # PyTorch Linear stores weight as (out, in); build that then transpose
    # to (in, out) for the kernel's x @ W layout.
    fc1_w = jax.random.normal(k1, (hidden_features, in_features),
                              dtype=jnp.float32) * 0.05
    fc2_w = jax.random.normal(k2, (out_features, hidden_features),
                              dtype=jnp.float32) * 0.05
    w1_t = fc1_w.T  # (in, hidden)
    w2_t = fc2_w.T  # (hidden, out)

    # --- f32 path: tight check against the exact-erf reference -------------
    out = jax.block_until_ready(adaptor_mlp(x, w1_t, w2_t))
    ref = reference_mlp(x, w1_t, w2_t)
    assert out.shape == (batch, seq, out_features)
    assert jnp.allclose(out, ref, atol=1e-5, rtol=1e-5), "f32 mismatch vs reference"

    # --- bf16 path: MXU-native operands, f32 accumulation -------------------
    xb = x.astype(jnp.bfloat16)
    w1b = w1_t.astype(jnp.bfloat16)
    w2b = w2_t.astype(jnp.bfloat16)
    out_b = jax.block_until_ready(adaptor_mlp(xb, w1b, w2b))
    ref_b = reference_mlp(xb, w1b, w2b)
    assert out_b.shape == (batch, seq, out_features)
    assert jnp.allclose(out_b.astype(jnp.float32), ref_b.astype(jnp.float32),
                        atol=5e-2, rtol=5e-2), "bf16 mismatch vs reference"

    print("KERNEL_OK")
</pallas_src>

<mosaic_0001>
module attributes {stable_mosaic.version = 11 : i64} {
  func.func @_mlp_kernel(%arg0: i32, %arg1: memref<16x32xf32, #tpu.memory_space<vmem>>, %arg2: memref<32x64xf32, #tpu.memory_space<vmem>>, %arg3: memref<64x32xf32, #tpu.memory_space<vmem>>, %arg4: memref<16x32xf32, #tpu.memory_space<vmem>>) attributes {dimension_semantics = [#tpu.dimension_semantics<parallel>], iteration_bounds = array<i64: 1>, scalar_prefetch = 0 : i64, scratch_operands = 0 : i64, tpu.core_type = #tpu.core_type<tc>, window_params = [{transform_indices = @transform_0, window_bounds = array<i64: 16, 32>}, {pipeline_mode = #tpu.pipeline_mode<synchronous>, transform_indices = @transform_1, window_bounds = array<i64: 32, 64>}, {pipeline_mode = #tpu.pipeline_mode<synchronous>, transform_indices = @transform_2, window_bounds = array<i64: 64, 32>}, {transform_indices = @transform_3, window_bounds = array<i64: 16, 32>}]} {
    %c0 = arith.constant 0 : index
    %c0_0 = arith.constant 0 : index
    %0 = vector.load %arg1[%c0, %c0_0] : memref<16x32xf32, #tpu.memory_space<vmem>>, vector<16x32xf32>
    %c0_1 = arith.constant 0 : index
    %c0_2 = arith.constant 0 : index
    %1 = vector.load %arg2[%c0_1, %c0_2] : memref<32x64xf32, #tpu.memory_space<vmem>>, vector<32x64xf32>
    %cst = arith.constant dense<0.000000e+00> : vector<16x64xf32>
    %2 = tpu.matmul %0, %1, %cst {dimension_numbers = #tpu.dot_dimension_numbers<[1], [0], [0], [1], [0, 0, 1, 1], [], []>} : vector<16x32xf32>, vector<32x64xf32>, vector<16x64xf32> -> vector<16x64xf32>
    %cst_3 = arith.constant 5.000000e-01 : f32
    %3 = vector.broadcast %cst_3 : f32 to vector<16x64xf32>
    %4 = arith.mulf %3, %2 : vector<16x64xf32>
    %cst_4 = arith.constant 0.707106769 : f32
    %5 = vector.broadcast %cst_4 : f32 to vector<16x64xf32>
    %6 = arith.mulf %2, %5 : vector<16x64xf32>
    %7 = math.erf %6 : vector<16x64xf32>
    %cst_5 = arith.constant 1.000000e+00 : f32
    %8 = vector.broadcast %cst_5 : f32 to vector<16x64xf32>
    %9 = arith.addf %8, %7 : vector<16x64xf32>
    %10 = arith.mulf %4, %9 : vector<16x64xf32>
    %c0_6 = arith.constant 0 : index
    %c0_7 = arith.constant 0 : index
    %11 = vector.load %arg3[%c0_6, %c0_7] : memref<64x32xf32, #tpu.memory_space<vmem>>, vector<64x32xf32>
    %cst_8 = arith.constant dense<0.000000e+00> : vector<16x32xf32>
    %12 = tpu.matmul %10, %11, %cst_8 {dimension_numbers = #tpu.dot_dimension_numbers<[1], [0], [0], [1], [0, 0, 1, 1], [], []>} : vector<16x64xf32>, vector<64x32xf32>, vector<16x32xf32> -> vector<16x32xf32>
    %c0_9 = arith.constant 0 : index
    %c0_10 = arith.constant 0 : index
    %13 = vector.load %arg4[%c0_9, %c0_10] : memref<16x32xf32, #tpu.memory_space<vmem>>, vector<16x32xf32>
    tpu.vector_store %arg4[%c0_9, %c0_10], %12 {strides = array<i32>} : memref<16x32xf32, #tpu.memory_space<vmem>>, vector<16x32xf32>,
    return
  }
  func.func @transform_0(%arg0: i32) -> (i32, i32) {
    %c0_i32 = arith.constant 0 : i32
    %c0_i32_0 = arith.constant 0 : i32
    return %arg0, %c0_i32 : i32, i32
  }
  func.func @transform_1(%arg0: i32) -> (i32, i32) {
    %c0_i32 = arith.constant 0 : i32
    %c0_i32_0 = arith.constant 0 : i32
    %c0_i32_1 = arith.constant 0 : i32
    return %c0_i32, %c0_i32_0 : i32, i32
  }
  func.func @transform_2(%arg0: i32) -> (i32, i32) {
    %c0_i32 = arith.constant 0 : i32
    %c0_i32_0 = arith.constant 0 : i32
    %c0_i32_1 = arith.constant 0 : i32
    return %c0_i32, %c0_i32_0 : i32, i32
  }
  func.func @transform_3(%arg0: i32) -> (i32, i32) {
    %c0_i32 = arith.constant 0 : i32
    %c0_i32_0 = arith.constant 0 : i32
    return %arg0, %c0_i32 : i32, i32
  }
}

</mosaic_0001>

<bundles_post_ra>
// kernel: adaptor_mlp.1
= control target key start
LH: loop header
LB: loop body
LE: loop exit
PB: predicated region body
PF: predicated region fallthrough
CT: control target
= control target key end

     0   :  { %vm21_vm0 = vcmask 261120   ;;  %s407_s0 = inlined_call_operand.vmem [shape: f32[16,32], index: 0, kind: input, shape index: {}]   ;;  %s408_s1 = inlined_call_operand.vmem [shape: f32[32,64], index: 1, kind: input, shape index: {}]   ;;  %s409_s2 = inlined_call_operand.vmem [shape: f32[64,32], index: 2, kind: input, shape index: {}]   ;;  %s410_s3 = inlined_call_operand.hbm [shape: f32[16,32], index: 3, kind: output, shape index: {}]  }
   0x1   :  { %v17_v0 = vld [vmem:[%s408_s1] sm:$0xff]  ;;  %v18_v1 = vld [vmem:[%s408_s1 + $0x8] sm:$0xff]  ;;  %v19_v2 = vld [vmem:[%s408_s1 + $0x10] sm:$0xff] }
   0x2   :  { %v271_v3 = vpack.c.bf16 %v18_v1, %v17_v0  ;;  %v20_v4 = vld [vmem:[%s408_s1 + $0x18] sm:$0xff]  ;;  %v15_v5 = vld [vmem:[%s407_s0] sm:$0xff] }
   0x3   :  { %v275_v6 = vpack.c.bf16 %v20_v4, %v19_v2  ;;  %249 = vmatprep.mubr.msk.f32.mxu0 %vm21_vm0, %v15_v5 }
   0x4   :  { %8 = vsyncpa [#allocation3], 0  ;;  %272 = vmatprep.subr.bf16.mxu0 %v271_v3  ;;  %v16_v7 = vld [vmem:[%s407_s0 + $0x8] sm:$0xff]  ;;  %v113_v8 = vld [vmem:[%s409_s2] sm:$0xff]  ;;  %vm121_vm1 = vcmask 523264  }
   0x5   :  { %274 = vmatpush3.bf16.msra.mxu0 %v271_v3  ;;  %v114_v9 = vld [vmem:[%s409_s2 + $0x8] sm:$0xff]  ;;  %v115_v11 = vld [vmem:[%s409_s2 + $0x10] sm:$0xff]  ;;  %v116_v12 = vld [vmem:[%s409_s2 + $0x18] sm:$0xff] }
   0x6   :  { %276 = vmatprep.subr.bf16.mxu0 %v275_v6  ;;  %v279_v10 = vpack.c.bf16 %v114_v9, %v113_v8  ;;  %v283_v13 = vpack.c.bf16 %v116_v12, %v115_v11  ;;  %v117_v14 = vld [vmem:[%s409_s2 + $0x20] sm:$0xff]  ;;  %v118_v15 = vld [vmem:[%s409_s2 + $0x28] sm:$0xff]  ;;  %v119_v17 = vld [vmem:[%s409_s2 + $0x30] sm:$0xff] }
   0x7   :  { %v287_v16 = vpack.c.bf16 %v118_v15, %v117_v14  ;;  %v120_v18 = vld [vmem:[%s409_s2 + $0x38] sm:$0xff]  ;;  %s326_s2 = smov [#allocation2]  }
   0x8   :  { %280 = vmatprep.subr.bf16.mxu1 %v279_v10  ;;  %v291_v19 = vpack.c.bf16 %v120_v18, %v119_v17  ;;  %s210_s11 = sshll.u32 %s326_s2, 4  ;;  %s211_s11 = int_to_ptr.vmem [resolvable:$true] %s210_s11 }
   0x9   :  { %278 = vmatpush3.bf16.msra.mxu0 %v275_v6  ;;  %282 = vmatpush3.bf16.msra.mxu1 %v279_v10  ;;  %s302_s12 = scalar_lea.vmem %s211_s11, 256  ;;  %p307_p1 = scmp.lt.s32.totalorder %s211_s11, %s211_s11 }
   0xa   :  { %284 = vmatprep.subr.bf16.mxu1 %v283_v13  ;;  %p303_p0 = scmp.ne.s32.totalorder %s211_s11, %s302_s12  ;;  %p308_p2 = scmp.lt.s32.totalorder %s302_s12, %s302_s12 }
   0xc   :  { %250 = vmatmul.mubr.msk.f32.vlgmr.msra.gmra.mrb[0].mxu0 %vm21_vm0, %v16_v7  ;;  %p309_p3 = por %p308_p2, %p307_p1 }
   0xd   :  { %286 = vmatpush3.bf16.msra.mxu1 %v283_v13 }
   0xe   :  { %288 = vmatprep.subr.bf16.mxu1 %v287_v16  ;;  %p310_p4 = pnand %p309_p3, %p303_p0 }
  0x11   :  { %290 = vmatpush3.bf16.msra.mxu1 %v287_v16 }
  0x12   :  { %292 = vmatprep.subr.bf16.mxu1 %v291_v19 }
  0x15   :  { %294 = vmatpush3.bf16.msra.mxu1 %v291_v19 }
  0xdf   :  { %v251_v20 = vpop.f32.mrb[0].mxu0 }
  0xe0   :  { %v106_v21 = vmul.f32 0.70710677, %v251_v20  ;;  %v94_v22 = vpop.f32.mrb[1].mxu0  ;;  %v104_v29 = vmul.f32 0.5, %v251_v20 }
  0xe1   :  { %v105_v23 = vmul.f32 0.70710677, %v94_v22  ;;  %v103_v27 = vmul.f32 0.5, %v94_v22 }
  0xe2   :  { %298 = verf.f32 %v106_v21 }
  0xe3   :  { %300 = verf.f32 %v105_v23 }
  0xec   :  { %v299_v24 = vpop.eup %298 }
  0xed   :  { %v301_v25 = vpop.eup %300  ;;  %v110_v26 = vadd.f32 1.0, %v299_v24 }
  0xee   :  { %v109_v28 = vadd.f32 1.0, %v301_v25 }
  0xef   :  { %v112_v31 = vmul.f32 %v110_v26, %v104_v29 }
  0xf0   :  { %v111_v30 = vmul.f32 %v109_v28, %v103_v27 }
  0xf2   :  { %268 = vmatprep.mubr.msk.f32.mxu1 %vm121_vm1, %v111_v30 }
  0xf3   :  { %269 = vmatmul.mubr.msk.f32.vlgmr.msra.gmra.mrb[0].mxu1 %vm121_vm1, %v112_v31 }
 0x1c6   :  { %v270_v32 = vpop.f32.mrb[0].mxu1 }
 0x1c7   :  { %204 = vst.msk [vmem:[#allocation2 + $0x8] sm:$0xff] %vm21_vm0, %v270_v32  ;;  %v194_v33 = vpop.f32.mrb[1].mxu1 }
 0x1c8   :  { %203 = vst.msk [vmem:[#allocation2] sm:$0xff] %vm21_vm0, %v194_v33 }
 0x1c9   :  { %313 = shalt.err (!%p310_p4)
}
 0x1ca   :  { %s314_s15 = scalar_lea.hbm %s410_s3, 256 }
 0x1cb   :  { %p315_p5 = scmp.ne.s32.totalorder %s410_s3, %s314_s15  ;;  %p318_p6 = scmp.lt.u32.totalorder %s314_s15, %s410_s3 }
 0x1cd   :  { %p320_p7 = pnand %p318_p6, %p315_p5 }
 0x1cf   :  { %323 = shalt.err (!%p320_p7)
}
 0x1d0   :  { %s327_s20 = smov 128   ;;  %s328_s21 = smov 8  }
 0x1d1   :  { %216 = dma.vmem_to_hbm [thread:$0]  %s211_s11, 256, %s410_s3, [#allocation3], %s327_s20, %s327_s20, %s328_s21  }
 0x1d2   :  { %324 = dma.done.wait [#allocation3], 256  }
 0x1d3   :  { %325 = vsyncadd [#allocation3], 4294967040 }
 0x1d4   :  { %220 = vsyncpa [#allocation3], 1 }

</bundles_post_ra>
